<compile_context>
chip_gen: v7x
topology: tpu7x:2x2x1
jax: 0.10.0
libtpu: 0.0.40
codegen_flags: <defaults>
</compile_context>

<pallas_src>
import math

import jax
import jax.numpy as jnp
import numpy as np
from jax.experimental import pallas as pl
from jax.experimental.pallas import tpu as pltpu

LANES = 128  # TPU lane width; every feature dim is padded to this


# ---------------------------------------------------------------------------
# Faithful mirror of the PyTorch network-construction logic (same float math),
# producing a flat op list: ('linear', in, out) | ('tanh',) | ('relu',) | ('leaky_relu',)
# ---------------------------------------------------------------------------
def gen_even_step_dims(starting_dim, end_dim, layer_number):
    dim_step_size = (end_dim - starting_dim) / layer_number
    last_out_dim = starting_dim
    next_out_dim = starting_dim + dim_step_size
    if end_dim > starting_dim:
        end_cond = lambda dim: dim < end_dim
    else:
        end_cond = lambda dim: dim > end_dim
    dims = []
    while end_cond(next_out_dim):
        dims.append((int(last_out_dim), int(next_out_dim)))
        last_out_dim = next_out_dim
        next_out_dim = last_out_dim + dim_step_size
    return dims, last_out_dim


def build_ops(input_dim):
    dims_up, last = gen_even_step_dims(input_dim, 120, 2)
    dims_down, last = gen_even_step_dims(last, 5, 10)
    linear_ops = [("linear", i, o) for (i, o) in dims_up + dims_down]
    # intersperse(base_list, nn.Tanh())
    ops = [("tanh",)] * (len(linear_ops) * 2 - 1)
    ops[0::2] = linear_ops
    ops.append(("relu",))
    ops.append(("linear", int(last), 1))
    ops[5] = ("leaky_relu",)  # layers[5] = nn.LeakyReLU()
    return ops


# ---------------------------------------------------------------------------
# Parameter packing: one padded lane-aligned weight slab + one bias slab.
# Weights in bf16 (native MXU operand dtype), biases in f32 (f32 VPU chain).
# ---------------------------------------------------------------------------
def pack_params(ops, params, w_dtype=jnp.bfloat16, b_dtype=jnp.float32):
    lin_dims = [(op[1], op[2]) for op in ops if op[0] == "linear"]
    n_lin = len(lin_dims)
    assert len(params) == n_lin
    w_slab = np.zeros((n_lin, LANES, LANES), np.float32)
    b_slab = np.zeros((n_lin, 1, LANES), np.float32)
    for li, ((fin, fout), (w, b)) in enumerate(zip(lin_dims, params)):
        assert fin <= LANES and fout <= LANES, "feature dim exceeds 128 lanes"
        w_slab[li, :fin, :fout] = np.asarray(w, np.float32)
        b_slab[li, 0, :fout] = np.asarray(b, np.float32).reshape(-1)
    return jnp.asarray(w_slab, w_dtype), jnp.asarray(b_slab, b_dtype)


# ---------------------------------------------------------------------------
# Pallas kernel: the whole MLP fused; every matmul is a clean 128x128 MXU tile.
# ---------------------------------------------------------------------------
def make_mlp_kernel(ops):
    def kernel(x_ref, w_ref, b_ref, o_ref):
        h = x_ref[...]  # (rows, 128) f32
        li = 0
        for op in ops:  # static Python loop -> fully unrolled at trace time
            if op[0] == "linear":
                # bf16 operands into the MXU, f32 accumulation.
                h = jnp.dot(h.astype(jnp.bfloat16), w_ref[li],
                            preferred_element_type=jnp.float32)
                h = h + b_ref[li]  # (1, 128) sublane-broadcast add, f32
                li += 1
            elif op[0] == "tanh":
                h = jnp.tanh(h)  # EUP; tanh(0)=0 keeps padded lanes at 0
            elif op[0] == "relu":
                h = jnp.maximum(h, 0.0)
            elif op[0] == "leaky_relu":
                h = jnp.where(h >= 0, h, 0.01 * h)  # negative_slope=0.01
        o_ref[...] = h.astype(o_ref.dtype)  # lane-dense (rows, 128) store

    return kernel


def _round_up(n, m):
    return ((n + m - 1) // m) * m


def _pick_block_rows(rows, max_block=1024, min_steps=4):
    """Adaptive row tile: <= max_block, >= min_steps grid steps (so the x/out
    double-buffering overlaps DMA with compute and both v7x TCs get >= 2
    steps), multiple of 8, and round-up never adds more than ~a few rows."""
    steps = max(min_steps, -(-rows // max_block))
    return max(_round_up(-(-rows // steps), 8), 8)


def _cost_estimate(rows, n_lin, n_tanh, in_bytes):
    return pl.CostEstimate(
        flops=2 * rows * LANES * LANES * n_lin,
        transcendentals=rows * LANES * n_tanh,
        bytes_accessed=in_bytes + rows * LANES * 4,
    )


def mlp_forward(x, w_slab, b_slab, ops, *, max_block_rows=1024):
    """x: (batch, input_dim) f32  ->  (batch, 1) f32."""
    batch, in_dim = x.shape
    assert in_dim <= LANES
    n_lin = w_slab.shape[0]
    n_tanh = sum(1 for op in ops if op[0] == "tanh")
    kernel = make_mlp_kernel(ops)

    rows = _round_up(max(batch, 8), 8)
    use_grid = rows >= 256  # below this, one VMEM-resident invocation
    if use_grid:
        block_rows = _pick_block_rows(rows, max_block_rows)
        rows = _round_up(rows, block_rows)

    # NOTE: padded batch rows pick up bias and flow through the activations
    # (bounded garbage); they are sliced off below and never read.
    x_pad = jnp.zeros((rows, LANES), jnp.float32).at[:batch, :in_dim].set(
        x.astype(jnp.float32)
    )
    slab_bytes = (w_slab.size * w_slab.dtype.itemsize
                  + b_slab.size * b_slab.dtype.itemsize)
    cost = _cost_estimate(rows, n_lin, n_tanh, rows * LANES * 4 + slab_bytes)

    if not use_grid:
        # Latency-bound small-batch path: single invocation, 3 DMAs, all VMEM.
        # TODO(synk): if this path is hot, hide the ~0.4 MiB bf16 weight-slab
        # DMA with a cross-pallas_call prefetch (P10: start the DMA in a prior
        # call, return sem + VMEM ref, consume it here).
        out = pl.pallas_call(
            kernel,
            out_shape=jax.ShapeDtypeStruct((rows, LANES), jnp.float32),
            in_specs=[pl.BlockSpec(memory_space=pltpu.MemorySpace.VMEM)] * 3,
            out_specs=pl.BlockSpec(memory_space=pltpu.MemorySpace.VMEM),
            cost_estimate=cost,
        )(x_pad, w_slab, b_slab)
    else:
        # Row-tiled path: stream/double-buffer x and out tiles, weights resident.
        # Weight/bias specs are constant-indexed so they are fetched only once;
        # at < 1 MiB total, single-buffering them would free no meaningful VMEM
        # (total footprint ~3 MiB, far under the 32 MiB scoped limit), so the
        # default buffering is kept for lowering robustness.
        grid = (rows // block_rows,)
        out = pl.pallas_call(
            kernel,
            out_shape=jax.ShapeDtypeStruct((rows, LANES), jnp.float32),
            grid=grid,
            in_specs=[
                pl.BlockSpec((block_rows, LANES), lambda i: (i, 0)),
                pl.BlockSpec((n_lin, LANES, LANES), lambda i: (0, 0, 0)),
                pl.BlockSpec((n_lin, 1, LANES), lambda i: (0, 0, 0)),
            ],
            out_specs=pl.BlockSpec((block_rows, LANES), lambda i: (i, 0)),
            compiler_params=pltpu.CompilerParams(
                dimension_semantics=("parallel",)  # shard row tiles across TCs
            ),
            cost_estimate=cost,
        )(x_pad, w_slab, b_slab)

    return out[:batch, :1]


# ---------------------------------------------------------------------------
# Pure-JAX reference using the SAME arithmetic as the kernel (bf16 operands at
# the dot, f32 accumulation, f32 elementwise chain) for a tight sanity check.
# ---------------------------------------------------------------------------
def reference_forward(x, params, ops):
    h = x.astype(jnp.float32)
    li = 0
    for op in ops:
        if op[0] == "linear":
            w, b = params[li]
            li += 1
            h = jnp.dot(h.astype(jnp.bfloat16), w.astype(jnp.bfloat16),
                        preferred_element_type=jnp.float32) + b
        elif op[0] == "tanh":
            h = jnp.tanh(h)
        elif op[0] == "relu":
            h = jnp.maximum(h, 0.0)
        elif op[0] == "leaky_relu":
            h = jnp.where(h >= 0, h, 0.01 * h)
    return h


def init_params(ops, key):
    """Deterministic init mimicking PyTorch's default Linear init (U(-1/sqrt(fan_in), +))."""
    params = []
    for op in ops:
        if op[0] != "linear":
            continue
        fin, fout = op[1], op[2]
        key, kw, kb = jax.random.split(key, 3)
        bound = 1.0 / math.sqrt(fin)
        w = jax.random.uniform(kw, (fin, fout), jnp.float32, -bound, bound)
        b = jax.random.uniform(kb, (1, fout), jnp.float32, -bound, bound)
        params.append((w, b))
    return params


if __name__ == "__main__":
    INPUT_DIM = 32

    ops = build_ops(INPUT_DIM)
    # Resulting stack (for input_dim=32):
    # Linear(32,76) Tanh Linear(76,68) Tanh Linear(68,61) LeakyReLU
    # Linear(61,54) Tanh ... Linear(12,5) ReLU Linear(5,1)

    key = jax.random.PRNGKey(0)
    key, kx = jax.random.split(key)
    x = jax.random.normal(kx, (8, INPUT_DIM), jnp.float32)
    params = init_params(ops, key)
    w_slab, b_slab = pack_params(ops, params)

    # Small-batch / latency path (no grid, 3 DMAs, everything VMEM-resident).
    y = jax.block_until_ready(mlp_forward(x, w_slab, b_slab, ops))
    y_ref = jax.block_until_ready(reference_forward(x, params, ops))
    if y.shape != (8, 1) or not np.allclose(
        np.asarray(y), np.asarray(y_ref), rtol=2e-3, atol=2e-3
    ):
        raise AssertionError(f"Pallas output mismatch (small batch):\n{y}\nvs\n{y_ref}")

    # Row-tiled path (grid, 'parallel' semantics, adaptive block_rows, padded rows).
    key, kx2 = jax.random.split(key)
    x_big = jax.random.normal(kx2, (600, INPUT_DIM), jnp.float32)
    y_big = jax.block_until_ready(mlp_forward(x_big, w_slab, b_slab, ops))
    y_big_ref = jax.block_until_ready(reference_forward(x_big, params, ops))
    if y_big.shape != (600, 1) or not np.allclose(
        np.asarray(y_big), np.asarray(y_big_ref), rtol=2e-3, atol=2e-3
    ):
        raise AssertionError("Pallas output mismatch (large batch)")

    print("KERNEL_OK")
</pallas_src>

<mosaic_0001>
module attributes {stable_mosaic.version = 11 : i64} {
  func.func @kernel(%arg0: memref<8x128xf32, #tpu.memory_space<vmem>>, %arg1: memref<11x128x128xbf16, #tpu.memory_space<vmem>>, %arg2: memref<11x1x128xf32, #tpu.memory_space<vmem>>, %arg3: memref<8x128xf32, #tpu.memory_space<vmem>>) attributes {dimension_semantics = [], scalar_prefetch = 0 : i64, scratch_operands = 0 : i64, tpu.core_type = #tpu.core_type<tc>} {
    %c0 = arith.constant 0 : index
    %c0_0 = arith.constant 0 : index
    %0 = vector.load %arg0[%c0, %c0_0] : memref<8x128xf32, #tpu.memory_space<vmem>>, vector<8x128xf32>
    %1 = arith.truncf %0 : vector<8x128xf32> to vector<8x128xbf16>
    %c0_1 = arith.constant 0 : index
    %c0_2 = arith.constant 0 : index
    %c0_3 = arith.constant 0 : index
    %2 = vector.load %arg1[%c0_1, %c0_2, %c0_3] : memref<11x128x128xbf16, #tpu.memory_space<vmem>>, vector<1x128x128xbf16>
    %3 = vector.shape_cast %2 : vector<1x128x128xbf16> to vector<128x128xbf16>
    %cst = arith.constant dense<0.000000e+00> : vector<8x128xf32>
    %4 = tpu.matmul %1, %3, %cst {dimension_numbers = #tpu.dot_dimension_numbers<[1], [0], [0], [1], [0, 0, 1, 1], [], []>} : vector<8x128xbf16>, vector<128x128xbf16>, vector<8x128xf32> -> vector<8x128xf32>
    %c0_4 = arith.constant 0 : index
    %c0_5 = arith.constant 0 : index
    %c0_6 = arith.constant 0 : index
    %5 = vector.load %arg2[%c0_4, %c0_5, %c0_6] : memref<11x1x128xf32, #tpu.memory_space<vmem>>, vector<1x1x128xf32>
    %6 = vector.shape_cast %5 : vector<1x1x128xf32> to vector<1x128xf32>
    %7 = vector.broadcast %6 : vector<1x128xf32> to vector<8x128xf32>
    %8 = arith.addf %4, %7 : vector<8x128xf32>
    %9 = math.tanh %8 : vector<8x128xf32>
    %10 = arith.truncf %9 : vector<8x128xf32> to vector<8x128xbf16>
    %c1 = arith.constant 1 : index
    %c0_7 = arith.constant 0 : index
    %c0_8 = arith.constant 0 : index
    %11 = vector.load %arg1[%c1, %c0_7, %c0_8] : memref<11x128x128xbf16, #tpu.memory_space<vmem>>, vector<1x128x128xbf16>
    %12 = vector.shape_cast %11 : vector<1x128x128xbf16> to vector<128x128xbf16>
    %cst_9 = arith.constant dense<0.000000e+00> : vector<8x128xf32>
    %13 = tpu.matmul %10, %12, %cst_9 {dimension_numbers = #tpu.dot_dimension_numbers<[1], [0], [0], [1], [0, 0, 1, 1], [], []>} : vector<8x128xbf16>, vector<128x128xbf16>, vector<8x128xf32> -> vector<8x128xf32>
    %c1_10 = arith.constant 1 : index
    %c0_11 = arith.constant 0 : index
    %c0_12 = arith.constant 0 : index
    %14 = vector.load %arg2[%c1_10, %c0_11, %c0_12] : memref<11x1x128xf32, #tpu.memory_space<vmem>>, vector<1x1x128xf32>
    %15 = vector.shape_cast %14 : vector<1x1x128xf32> to vector<1x128xf32>
    %16 = vector.broadcast %15 : vector<1x128xf32> to vector<8x128xf32>
    %17 = arith.addf %13, %16 : vector<8x128xf32>
    %18 = math.tanh %17 : vector<8x128xf32>
    %19 = arith.truncf %18 : vector<8x128xf32> to vector<8x128xbf16>
    %c2 = arith.constant 2 : index
    %c0_13 = arith.constant 0 : index
    %c0_14 = arith.constant 0 : index
    %20 = vector.load %arg1[%c2, %c0_13, %c0_14] : memref<11x128x128xbf16, #tpu.memory_space<vmem>>, vector<1x128x128xbf16>
    %21 = vector.shape_cast %20 : vector<1x128x128xbf16> to vector<128x128xbf16>
    %cst_15 = arith.constant dense<0.000000e+00> : vector<8x128xf32>
    %22 = tpu.matmul %19, %21, %cst_15 {dimension_numbers = #tpu.dot_dimension_numbers<[1], [0], [0], [1], [0, 0, 1, 1], [], []>} : vector<8x128xbf16>, vector<128x128xbf16>, vector<8x128xf32> -> vector<8x128xf32>
    %c2_16 = arith.constant 2 : index
    %c0_17 = arith.constant 0 : index
    %c0_18 = arith.constant 0 : index
    %23 = vector.load %arg2[%c2_16, %c0_17, %c0_18] : memref<11x1x128xf32, #tpu.memory_space<vmem>>, vector<1x1x128xf32>
    %24 = vector.shape_cast %23 : vector<1x1x128xf32> to vector<1x128xf32>
    %25 = vector.broadcast %24 : vector<1x128xf32> to vector<8x128xf32>
    %26 = arith.addf %22, %25 : vector<8x128xf32>
    %cst_19 = arith.constant 0.000000e+00 : f32
    %27 = vector.broadcast %cst_19 : f32 to vector<8x128xf32>
    %28 = arith.cmpf oge, %26, %27 : vector<8x128xf32>
    %cst_20 = arith.constant 0.00999999977 : f32
    %29 = vector.broadcast %cst_20 : f32 to vector<8x128xf32>
    %30 = arith.mulf %29, %26 : vector<8x128xf32>
    %31 = arith.select %28, %26, %30 : vector<8x128xi1>, vector<8x128xf32>
    %32 = arith.truncf %31 : vector<8x128xf32> to vector<8x128xbf16>
    %c3 = arith.constant 3 : index
    %c0_21 = arith.constant 0 : index
    %c0_22 = arith.constant 0 : index
    %33 = vector.load %arg1[%c3, %c0_21, %c0_22] : memref<11x128x128xbf16, #tpu.memory_space<vmem>>, vector<1x128x128xbf16>
    %34 = vector.shape_cast %33 : vector<1x128x128xbf16> to vector<128x128xbf16>
    %cst_23 = arith.constant dense<0.000000e+00> : vector<8x128xf32>
    %35 = tpu.matmul %32, %34, %cst_23 {dimension_numbers = #tpu.dot_dimension_numbers<[1], [0], [0], [1], [0, 0, 1, 1], [], []>} : vector<8x128xbf16>, vector<128x128xbf16>, vector<8x128xf32> -> vector<8x128xf32>
    %c3_24 = arith.constant 3 : index
    %c0_25 = arith.constant 0 : index
    %c0_26 = arith.constant 0 : index
    %36 = vector.load %arg2[%c3_24, %c0_25, %c0_26] : memref<11x1x128xf32, #tpu.memory_space<vmem>>, vector<1x1x128xf32>
    %37 = vector.shape_cast %36 : vector<1x1x128xf32> to vector<1x128xf32>
    %38 = vector.broadcast %37 : vector<1x128xf32> to vector<8x128xf32>
    %39 = arith.addf %35, %38 : vector<8x128xf32>
    %40 = math.tanh %39 : vector<8x128xf32>
    %41 = arith.truncf %40 : vector<8x128xf32> to vector<8x128xbf16>
    %c4 = arith.constant 4 : index
    %c0_27 = arith.constant 0 : index
    %c0_28 = arith.constant 0 : index
    %42 = vector.load %arg1[%c4, %c0_27, %c0_28] : memref<11x128x128xbf16, #tpu.memory_space<vmem>>, vector<1x128x128xbf16>
    %43 = vector.shape_cast %42 : vector<1x128x128xbf16> to vector<128x128xbf16>
    %cst_29 = arith.constant dense<0.000000e+00> : vector<8x128xf32>
    %44 = tpu.matmul %41, %43, %cst_29 {dimension_numbers = #tpu.dot_dimension_numbers<[1], [0], [0], [1], [0, 0, 1, 1], [], []>} : vector<8x128xbf16>, vector<128x128xbf16>, vector<8x128xf32> -> vector<8x128xf32>
    %c4_30 = arith.constant 4 : index
    %c0_31 = arith.constant 0 : index
    %c0_32 = arith.constant 0 : index
    %45 = vector.load %arg2[%c4_30, %c0_31, %c0_32] : memref<11x1x128xf32, #tpu.memory_space<vmem>>, vector<1x1x128xf32>
    %46 = vector.shape_cast %45 : vector<1x1x128xf32> to vector<1x128xf32>
    %47 = vector.broadcast %46 : vector<1x128xf32> to vector<8x128xf32>
    %48 = arith.addf %44, %47 : vector<8x128xf32>
    %49 = math.tanh %48 : vector<8x128xf32>
    %50 = arith.truncf %49 : vector<8x128xf32> to vector<8x128xbf16>
    %c5 = arith.constant 5 : index
    %c0_33 = arith.constant 0 : index
    %c0_34 = arith.constant 0 : index
    %51 = vector.load %arg1[%c5, %c0_33, %c0_34] : memref<11x128x128xbf16, #tpu.memory_space<vmem>>, vector<1x128x128xbf16>
    %52 = vector.shape_cast %51 : vector<1x128x128xbf16> to vector<128x128xbf16>
    %cst_35 = arith.constant dense<0.000000e+00> : vector<8x128xf32>
    %53 = tpu.matmul %50, %52, %cst_35 {dimension_numbers = #tpu.dot_dimension_numbers<[1], [0], [0], [1], [0, 0, 1, 1], [], []>} : vector<8x128xbf16>, vector<128x128xbf16>, vector<8x128xf32> -> vector<8x128xf32>
    %c5_36 = arith.constant 5 : index
    %c0_37 = arith.constant 0 : index
    %c0_38 = arith.constant 0 : index
    %54 = vector.load %arg2[%c5_36, %c0_37, %c0_38] : memref<11x1x128xf32, #tpu.memory_space<vmem>>, vector<1x1x128xf32>
    %55 = vector.shape_cast %54 : vector<1x1x128xf32> to vector<1x128xf32>
    %56 = vector.broadcast %55 : vector<1x128xf32> to vector<8x128xf32>
    %57 = arith.addf %53, %56 : vector<8x128xf32>
    %58 = math.tanh %57 : vector<8x128xf32>
    %59 = arith.truncf %58 : vector<8x128xf32> to vector<8x128xbf16>
    %c6 = arith.constant 6 : index
    %c0_39 = arith.constant 0 : index
    %c0_40 = arith.constant 0 : index
    %60 = vector.load %arg1[%c6, %c0_39, %c0_40] : memref<11x128x128xbf16, #tpu.memory_space<vmem>>, vector<1x128x128xbf16>
    %61 = vector.shape_cast %60 : vector<1x128x128xbf16> to vector<128x128xbf16>
    %cst_41 = arith.constant dense<0.000000e+00> : vector<8x128xf32>
    %62 = tpu.matmul %59, %61, %cst_41 {dimension_numbers = #tpu.dot_dimension_numbers<[1], [0], [0], [1], [0, 0, 1, 1], [], []>} : vector<8x128xbf16>, vector<128x128xbf16>, vector<8x128xf32> -> vector<8x128xf32>
    %c6_42 = arith.constant 6 : index
    %c0_43 = arith.constant 0 : index
    %c0_44 = arith.constant 0 : index
    %63 = vector.load %arg2[%c6_42, %c0_43, %c0_44] : memref<11x1x128xf32, #tpu.memory_space<vmem>>, vector<1x1x128xf32>
    %64 = vector.shape_cast %63 : vector<1x1x128xf32> to vector<1x128xf32>
    %65 = vector.broadcast %64 : vector<1x128xf32> to vector<8x128xf32>
    %66 = arith.addf %62, %65 : vector<8x128xf32>
    %67 = math.tanh %66 : vector<8x128xf32>
    %68 = arith.truncf %67 : vector<8x128xf32> to vector<8x128xbf16>
    %c7 = arith.constant 7 : index
    %c0_45 = arith.constant 0 : index
    %c0_46 = arith.constant 0 : index
    %69 = vector.load %arg1[%c7, %c0_45, %c0_46] : memref<11x128x128xbf16, #tpu.memory_space<vmem>>, vector<1x128x128xbf16>
    %70 = vector.shape_cast %69 : vector<1x128x128xbf16> to vector<128x128xbf16>
    %cst_47 = arith.constant dense<0.000000e+00> : vector<8x128xf32>
    %71 = tpu.matmul %68, %70, %cst_47 {dimension_numbers = #tpu.dot_dimension_numbers<[1], [0], [0], [1], [0, 0, 1, 1], [], []>} : vector<8x128xbf16>, vector<128x128xbf16>, vector<8x128xf32> -> vector<8x128xf32>
    %c7_48 = arith.constant 7 : index
    %c0_49 = arith.constant 0 : index
    %c0_50 = arith.constant 0 : index
    %72 = vector.load %arg2[%c7_48, %c0_49, %c0_50] : memref<11x1x128xf32, #tpu.memory_space<vmem>>, vector<1x1x128xf32>
    %73 = vector.shape_cast %72 : vector<1x1x128xf32> to vector<1x128xf32>
    %74 = vector.broadcast %73 : vector<1x128xf32> to vector<8x128xf32>
    %75 = arith.addf %71, %74 : vector<8x128xf32>
    %76 = math.tanh %75 : vector<8x128xf32>
    %77 = arith.truncf %76 : vector<8x128xf32> to vector<8x128xbf16>
    %c8 = arith.constant 8 : index
    %c0_51 = arith.constant 0 : index
    %c0_52 = arith.constant 0 : index
    %78 = vector.load %arg1[%c8, %c0_51, %c0_52] : memref<11x128x128xbf16, #tpu.memory_space<vmem>>, vector<1x128x128xbf16>
    %79 = vector.shape_cast %78 : vector<1x128x128xbf16> to vector<128x128xbf16>
    %cst_53 = arith.constant dense<0.000000e+00> : vector<8x128xf32>
    %80 = tpu.matmul %77, %79, %cst_53 {dimension_numbers = #tpu.dot_dimension_numbers<[1], [0], [0], [1], [0, 0, 1, 1], [], []>} : vector<8x128xbf16>, vector<128x128xbf16>, vector<8x128xf32> -> vector<8x128xf32>
    %c8_54 = arith.constant 8 : index
    %c0_55 = arith.constant 0 : index
    %c0_56 = arith.constant 0 : index
    %81 = vector.load %arg2[%c8_54, %c0_55, %c0_56] : memref<11x1x128xf32, #tpu.memory_space<vmem>>, vector<1x1x128xf32>
    %82 = vector.shape_cast %81 : vector<1x1x128xf32> to vector<1x128xf32>
    %83 = vector.broadcast %82 : vector<1x128xf32> to vector<8x128xf32>
    %84 = arith.addf %80, %83 : vector<8x128xf32>
    %85 = math.tanh %84 : vector<8x128xf32>
    %86 = arith.truncf %85 : vector<8x128xf32> to vector<8x128xbf16>
    %c9 = arith.constant 9 : index
    %c0_57 = arith.constant 0 : index
    %c0_58 = arith.constant 0 : index
    %87 = vector.load %arg1[%c9, %c0_57, %c0_58] : memref<11x128x128xbf16, #tpu.memory_space<vmem>>, vector<1x128x128xbf16>
    %88 = vector.shape_cast %87 : vector<1x128x128xbf16> to vector<128x128xbf16>
    %cst_59 = arith.constant dense<0.000000e+00> : vector<8x128xf32>
    %89 = tpu.matmul %86, %88, %cst_59 {dimension_numbers = #tpu.dot_dimension_numbers<[1], [0], [0], [1], [0, 0, 1, 1], [], []>} : vector<8x128xbf16>, vector<128x128xbf16>, vector<8x128xf32> -> vector<8x128xf32>
    %c9_60 = arith.constant 9 : index
    %c0_61 = arith.constant 0 : index
    %c0_62 = arith.constant 0 : index
    %90 = vector.load %arg2[%c9_60, %c0_61, %c0_62] : memref<11x1x128xf32, #tpu.memory_space<vmem>>, vector<1x1x128xf32>
    %91 = vector.shape_cast %90 : vector<1x1x128xf32> to vector<1x128xf32>
    %92 = vector.broadcast %91 : vector<1x128xf32> to vector<8x128xf32>
    %93 = arith.addf %89, %92 : vector<8x128xf32>
    %cst_63 = arith.constant 0.000000e+00 : f32
    %94 = vector.broadcast %cst_63 : f32 to vector<8x128xf32>
    %95 = arith.maximumf %93, %94 : vector<8x128xf32>
    %96 = arith.truncf %95 : vector<8x128xf32> to vector<8x128xbf16>
    %c10 = arith.constant 10 : index
    %c0_64 = arith.constant 0 : index
    %c0_65 = arith.constant 0 : index
    %97 = vector.load %arg1[%c10, %c0_64, %c0_65] : memref<11x128x128xbf16, #tpu.memory_space<vmem>>, vector<1x128x128xbf16>
    %98 = vector.shape_cast %97 : vector<1x128x128xbf16> to vector<128x128xbf16>
    %cst_66 = arith.constant dense<0.000000e+00> : vector<8x128xf32>
    %99 = tpu.matmul %96, %98, %cst_66 {dimension_numbers = #tpu.dot_dimension_numbers<[1], [0], [0], [1], [0, 0, 1, 1], [], []>} : vector<8x128xbf16>, vector<128x128xbf16>, vector<8x128xf32> -> vector<8x128xf32>
    %c10_67 = arith.constant 10 : index
    %c0_68 = arith.constant 0 : index
    %c0_69 = arith.constant 0 : index
    %100 = vector.load %arg2[%c10_67, %c0_68, %c0_69] : memref<11x1x128xf32, #tpu.memory_space<vmem>>, vector<1x1x128xf32>
    %101 = vector.shape_cast %100 : vector<1x1x128xf32> to vector<1x128xf32>
    %102 = vector.broadcast %101 : vector<1x128xf32> to vector<8x128xf32>
    %103 = arith.addf %99, %102 : vector<8x128xf32>
    %c0_70 = arith.constant 0 : index
    %c0_71 = arith.constant 0 : index
    %104 = vector.load %arg3[%c0_70, %c0_71] : memref<8x128xf32, #tpu.memory_space<vmem>>, vector<8x128xf32>
    tpu.vector_store %arg3[%c0_70, %c0_71], %103 {strides = array<i32>} : memref<8x128xf32, #tpu.memory_space<vmem>>, vector<8x128xf32>,
    return
  }
}

</mosaic_0001>

<bundles_post_ra>
// kernel: tpu_custom_call.1
= control target key start
LH: loop header
LB: loop body
LE: loop exit
PB: predicated region body
PF: predicated region fallthrough
CT: control target
= control target key end

     0   :  { %8 = vsyncpa [#allocation3], 0  ;;  %s2151_s0 = inlined_call_operand.hbm [shape: f32[8,128], index: 0, kind: input, shape index: {}]   ;;  %s2152_s1 = inlined_call_operand.hbm [shape: bf16[11,128,128], index: 1, kind: input, shape index: {}]   ;;  %s2153_s2 = inlined_call_operand.hbm [shape: f32[11,1,128], index: 2, kind: input, shape index: {}]   ;;  %s2154_s3 = inlined_call_operand.hbm [shape: f32[8,128], index: 3, kind: output, shape index: {}]  }
   0x1   :  { %9 = vsyncpa [#allocation6], 0 }
   0x2   :  { %10 = vsyncpa [#allocation4], 0  ;;  %s1963_s12 = smov [#allocation5]   ;;  %s1869_s16 = scalar_lea.hbm %s2152_s1, 11264 }
   0x3   :  { %s26_s13 = sshll.u32 %s1963_s12, 4  ;;  %p1870_p0 = scmp.ne.s32.totalorder %s2152_s1, %s1869_s16  ;;  %s27_s13 = int_to_ptr.vmem [resolvable:$true] %s26_s13 }
   0x4   :  { %p1873_p1 = scmp.lt.u32.totalorder %s1869_s16, %s2152_s1 }
   0x6   :  { %p1875_p2 = pnand %p1873_p1, %p1870_p0 }
   0x8   :  { %1878 = shalt.err (!%p1875_p2)
}
   0x9   :  { %s1879_s21 = scalar_lea.vmem %s27_s13, 11264  ;;  %p1884_p4 = scmp.lt.s32.totalorder %s27_s13, %s27_s13 }
   0xa   :  { %p1880_p3 = scmp.ne.s32.totalorder %s27_s13, %s1879_s21  ;;  %p1885_p5 = scmp.lt.s32.totalorder %s1879_s21, %s1879_s21 }
   0xc   :  { %p1886_p6 = por %p1885_p5, %p1884_p4 }
   0xe   :  { %p1887_p7 = pnand %p1886_p6, %p1880_p3 }
  0x10   :  { %1890 = shalt.err (!%p1887_p7)
}
  0x11   :  { %s1964_s22 = smov 64   ;;  %s1965_s23 = smov 4  }
  0x12   :  { %32 = dma.hbm_to_vmem [thread:$0]  %s2152_s1, 11264, %s27_s13, [#allocation6], %s1964_s22, %s1964_s22, %s1965_s23  }
  0x13   :  { %s1966_s26 = smov [#allocation2]   ;;  %s1967_s28 = smov [#allocation7]  }
  0x14   :  { %s17_s27 = sshll.u32 %s1966_s26, 4  ;;  %s38_s29 = sshll.u32 %s1967_s28, 4  ;;  %s18_s27 = int_to_ptr.vmem [resolvable:$true] %s17_s27  ;;  %s39_s29 = int_to_ptr.vmem [resolvable:$true] %s38_s29 }
  0x15   :  { %s1891_s5 = scalar_lea.hbm %s2151_s0, 128 }
  0x16   :  { %p1892_p8 = scmp.ne.s32.totalorder %s2151_s0, %s1891_s5  ;;  %p1895_p9 = scmp.lt.u32.totalorder %s1891_s5, %s2151_s0 }
  0x18   :  { %p1897_p10 = pnand %p1895_p9, %p1892_p8 }
  0x1a   :  { %1900 = shalt.err (!%p1897_p10)
}
  0x1b   :  { %s1901_s1 = scalar_lea.vmem %s18_s27, 128  ;;  %p1906_p12 = scmp.lt.s32.totalorder %s18_s27, %s18_s27 }
  0x1c   :  { %p1902_p11 = scmp.ne.s32.totalorder %s18_s27, %s1901_s1  ;;  %p1907_p13 = scmp.lt.s32.totalorder %s1901_s1, %s1901_s1 }
  0x1e   :  { %p1908_p0 = por %p1907_p13, %p1906_p12 }
  0x20   :  { %p1909_p1 = pnand %p1908_p0, %p1902_p11 }
  0x22   :  { %1912 = shalt.err (!%p1909_p1)
}
  0x23   :  { %20 = dma.hbm_to_vmem [thread:$0]  %s2151_s0, 128, %s18_s27, [#allocation3]  }
  0x24   :  { %s1913_s14 = scalar_lea.hbm %s2153_s2, 176 }
  0x25   :  { %p1914_p2 = scmp.ne.s32.totalorder %s2153_s2, %s1913_s14  ;;  %p1917_p3 = scmp.lt.u32.totalorder %s1913_s14, %s2153_s2 }
  0x27   :  { %p1919_p4 = pnand %p1917_p3, %p1914_p2 }
  0x29   :  { %1922 = shalt.err (!%p1919_p4)
}
  0x2a   :  { %s1923_s19 = scalar_lea.vmem %s39_s29, 176  ;;  %s1927_s20 = scalar_lea.vmem %s39_s29, 192 }
  0x2b   :  { %p1924_p5 = scmp.ne.s32.totalorder %s39_s29, %s1923_s19  ;;  %p1928_p6 = scmp.lt.s32.totalorder %s39_s29, %s39_s29 }
  0x2c   :  { %p1929_p7 = scmp.lt.s32.totalorder %s1927_s20, %s1923_s19 }
  0x2e   :  { %p1930_p8 = por %p1929_p7, %p1928_p6 }
  0x30   :  { %p1931_p9 = pnand %p1930_p8, %p1924_p5 }
  0x32   :  { %1934 = shalt.err (!%p1931_p9)
}
  0x33   :  { %s1968_s0 = smov 16   ;;  %s1969_s21 = smov 1  }
  0x34   :  { %44 = dma.hbm_to_vmem [thread:$0]  %s2153_s2, 176, %s39_s29, [#allocation6], %s1968_s0, %s1968_s0, %s1969_s21  }
  0x35   :  { %1957 = dma.done.wait [#allocation3], 128  }
  0x36   :  { %1958 = vsyncadd [#allocation3], 4294967168 }
  0x37   :  { %1959 = dma.done.wait [#allocation6], 11440  }
  0x38   :  { %1960 = vsyncadd [#allocation6], 4294955856  ;;  %v1970_v0 = vmov 0.0   ;;  %vm1971_vm0 = vmmov 0   ;;  %v1765_v1 = vld [vmem:[#allocation5] sm:$0xff]   ;;  %v1766_v2 = vld [vmem:[#allocation5 + $0x8] sm:$0xff]  }
  0x39   :  { %1535 = vmatprep.subr.bf16.mxu0 %v1970_v0  ;;  %1551 = vmatprep.mubr.msk.bf16.mxu0 %vm1971_vm0, %v1970_v0  ;;  %v1767_v3 = vld [vmem:[#allocation5 + $0x10] sm:$0xff]   ;;  %v1773_v4 = vld [vmem:[#allocation5 + $0x40] sm:$0xff]   ;;  %v1768_v5 = vld [vmem:[#allocation5 + $0x18] sm:$0xff]   ;;  %s1972_s2 = smov [#allocation8]  }
  0x3a   :  { %1555 = vmatprep.subr.bf16.mxu1 %v1970_v0  ;;  %1571 = vmatprep.mubr.msk.bf16.mxu1 %vm1971_vm0, %v1970_v0  ;;  %v1774_v6 = vld [vmem:[#allocation5 + $0x48] sm:$0xff]   ;;  %v1769_v7 = vld [vmem:[#allocation5 + $0x20] sm:$0xff]   ;;  %v1775_v8 = vld [vmem:[#allocation5 + $0x50] sm:$0xff]   ;;  %s1327_s24 = sshll.u32 %s1972_s2, 4  ;;  %s1328_s24 = int_to_ptr.vmem [resolvable:$true] %s1327_s24 }
  0x3b   :  { %1536 = vmatpush3.bf16.msra.mxu0 %v1765_v1  ;;  %1556 = vmatpush3.bf16.msra.mxu1 %v1773_v4  ;;  %v1770_v9 = vld [vmem:[#allocation5 + $0x28] sm:$0xff]   ;;  %v1776_v10 = vld [vmem:[#allocation5 + $0x58] sm:$0xff]   ;;  %v1771_v11 = vld [vmem:[#allocation5 + $0x30] sm:$0xff]   ;;  %s1935_s25 = scalar_lea.vmem %s1328_s24, 128  ;;  %p1940_p11 = scmp.lt.s32.totalorder %s1328_s24, %s1328_s24 }
  0x3c   :  { %1537 = vmatprep.subr.bf16.mxu0 %v1970_v0  ;;  %1557 = vmatprep.subr.bf16.mxu1 %v1970_v0  ;;  %v1772_v12 = vld [vmem:[#allocation5 + $0x38] sm:$0xff]   ;;  %v1777_v15 = vld [vmem:[#allocation5 + $0x60] sm:$0xff]   ;;  %v1778_v16 = vld [vmem:[#allocation5 + $0x68] sm:$0xff]   ;;  %p1936_p10 = scmp.ne.s32.totalorder %s1328_s24, %s1935_s25  ;;  %p1941_p12 = scmp.lt.s32.totalorder %s1935_s25, %s1935_s25 }
  0x3d   :  { %v55_v13 = vld [vmem:[#allocation2] sm:$0xff]  ;;  %v1779_v17 = vld [vmem:[#allocation5 + $0x70] sm:$0xff]   ;;  %v1781_v19 = vld [vmem:[#allocation5 + $0x80] sm:$0xff]  }
  0x3e   :  { %v56_v14 = vpack.c.bf16 %v55_v13, %v55_v13  ;;  %v1780_v18 = vld [vmem:[#allocation5 + $0x78] sm:$0xff]   ;;  %v1782_v20 = vld [vmem:[#allocation5 + $0x88] sm:$0xff]   ;;  %v1783_v21 = vld [vmem:[#allocation5 + $0x90] sm:$0xff]   ;;  %p1942_p13 = por %p1941_p12, %p1940_p11 }
  0x3f   :  { %1538 = vmatpush3.bf16.msra.mxu0 %v1766_v2  ;;  %1558 = vmatpush3.bf16.msra.mxu1 %v1774_v6  ;;  %v1784_v22 = vld [vmem:[#allocation5 + $0x98] sm:$0xff]   ;;  %v1337_v23 = vld [vmem:[#allocation7] ss:$0 sm:$0xff]  ;;  %v1786_v32 = vld [vmem:[#allocation5 + $0xa8] sm:$0xff]  }
  0x40   :  { %1539 = vmatprep.subr.bf16.mxu0 %v1970_v0  ;;  %1559 = vmatprep.subr.bf16.mxu1 %v1970_v0  ;;  %v1785_v31 = vld [vmem:[#allocation5 + $0xa0] sm:$0xff]   ;;  %v1787_v33 = vld [vmem:[#allocation5 + $0xb0] sm:$0xff]   ;;  %v1788_v34 = vld [vmem:[#allocation5 + $0xb8] sm:$0xff]   ;;  %p1943_p0 = pnand %p1942_p13, %p1936_p10 }
  0x41   :  { %v1789_v35 = vld [vmem:[#allocation5 + $0xc0] sm:$0xff]   ;;  %v1790_v36 = vld [vmem:[#allocation5 + $0xc8] sm:$0xff]   ;;  %v1791_v37 = vld [vmem:[#allocation5 + $0xd0] sm:$0xff]  }
  0x42   :  { %v1792_v38 = vld [vmem:[#allocation5 + $0xd8] sm:$0xff]   ;;  %v1793_v39 = vld [vmem:[#allocation5 + $0xe0] sm:$0xff]   ;;  %v1794_v40 = vld [vmem:[#allocation5 + $0xe8] sm:$0xff]  }
  0x43   :  { %1540 = vmatpush3.bf16.msra.mxu0 %v1767_v3  ;;  %1560 = vmatpush3.bf16.msra.mxu1 %v1775_v8  ;;  %v1346_v41 = vld [vmem:[#allocation7 + $0x1] ss:$0 sm:$0xff]  ;;  %v1795_v49 = vld [vmem:[#allocation5 + $0xf0] sm:$0xff]   ;;  %v1796_v50 = vld [vmem:[#allocation5 + $0xf8] sm:$0xff]  }
  0x44   :  { %1541 = vmatprep.subr.bf16.mxu0 %v1970_v0  ;;  %1561 = vmatprep.subr.bf16.mxu1 %v1970_v0  ;;  %v1797_v51 = vld [vmem:[#allocation5 + $0x100] sm:$0xff]   ;;  %v1798_v52 = vld [vmem:[#allocation5 + $0x108] sm:$0xff]   ;;  %v1799_v53 = vld [vmem:[#allocation5 + $0x110] sm:$0xff]  }
  0x45   :  { %v1800_v54 = vld [vmem:[#allocation5 + $0x118] sm:$0xff]   ;;  %v1355_v55 = vld [vmem:[#allocation7 + $0x2] ss:$0 sm:$0xff]  ;;  %v1802_v2 = vld [vmem:[#allocation5 + $0x128] sm:$0xff]  }
  0x46   :  { %v1801_v1 = vld [vmem:[#allocation5 + $0x120] sm:$0xff]   ;;  %v1803_v3 = vld [vmem:[#allocation5 + $0x130] sm:$0xff]   ;;  %v1804_v4 = vld [vmem:[#allocation5 + $0x138] sm:$0xff]  }
  0x47   :  { %1542 = vmatpush3.bf16.msra.mxu0 %v1768_v5  ;;  %1562 = vmatpush3.bf16.msra.mxu1 %v1776_v10  ;;  %v1805_v5 = vld [vmem:[#allocation5 + $0x140] sm:$0xff]   ;;  %v1806_v6 = vld [vmem:[#allocation5 + $0x148] sm:$0xff]   ;;  %v1808_v8 = vld [vmem:[#allocation5 + $0x158] sm:$0xff]  }
  0x48   :  { %1543 = vmatprep.subr.bf16.mxu0 %v1970_v0  ;;  %1563 = vmatprep.subr.bf16.mxu1 %v1970_v0 }
  0x4b   :  { %1544 = vmatpush3.bf16.msra.mxu0 %v1769_v7  ;;  %1564 = vmatpush3.bf16.msra.mxu1 %v1777_v15  ;;  %v1807_v7 = vld [vmem:[#allocation5 + $0x150] sm:$0xff]  }
  0x4c   :  { %1545 = vmatprep.subr.bf16.mxu0 %v1970_v0  ;;  %1565 = vmatprep.subr.bf16.mxu1 %v1970_v0 }
  0x4f   :  { %1546 = vmatpush3.bf16.msra.mxu0 %v1770_v9  ;;  %1566 = vmatpush3.bf16.msra.mxu1 %v1778_v16  ;;  %v1364_v9 = vld [vmem:[#allocation7 + $0x3] ss:$0 sm:$0xff] }
  0x50   :  { %1547 = vmatprep.subr.bf16.mxu0 %v1970_v0  ;;  %1567 = vmatprep.subr.bf16.mxu1 %v1970_v0 }
  0x53   :  { %1548 = vmatpush3.bf16.msra.mxu0 %v1771_v11  ;;  %1568 = vmatpush3.bf16.msra.mxu1 %v1779_v17  ;;  %v1809_v17 = vld [vmem:[#allocation5 + $0x160] sm:$0xff]  }
  0x54   :  { %1549 = vmatprep.subr.bf16.mxu0 %v1970_v0  ;;  %1569 = vmatprep.subr.bf16.mxu1 %v1970_v0 }
  0x57   :  { %1550 = vmatpush3.bf16.msra.mxu0 %v1772_v12  ;;  %1570 = vmatpush3.bf16.msra.mxu1 %v1780_v18  ;;  %v1810_v18 = vld [vmem:[#allocation5 + $0x168] sm:$0xff]  }
  0x58   :  { %1575 = vmatprep.subr.bf16.mxu0 %v1970_v0  ;;  %1595 = vmatprep.subr.bf16.mxu1 %v1970_v0 }
  0x5a   :  { %1552 = vmatmul.mubr.bf16.vlgmr.msra.gmra.mrb[0].mxu0 %v56_v14 }
  0x5b   :  { %1591 = vmatprep.mubr.msk.bf16.mxu0 %vm1971_vm0, %v1970_v0  ;;  %1576 = vmatpush3.bf16.msra.mxu0 %v1781_v19  ;;  %v1811_v19 = vld [vmem:[#allocation5 + $0x170] sm:$0xff]  }
  0x5c   :  { %1577 = vmatprep.subr.bf16.mxu0 %v1970_v0 }
  0x5f   :  { %1578 = vmatpush3.bf16.msra.mxu0 %v1782_v20  ;;  %v1812_v20 = vld [vmem:[#allocation5 + $0x178] sm:$0xff]  }
  0x60   :  { %1579 = vmatprep.subr.bf16.mxu0 %v1970_v0 }
  0x63   :  { %1580 = vmatpush3.bf16.msra.mxu0 %v1783_v21  ;;  %v1813_v21 = vld [vmem:[#allocation5 + $0x180] sm:$0xff]  }
  0x64   :  { %1581 = vmatprep.subr.bf16.mxu0 %v1970_v0 }
  0x67   :  { %1582 = vmatpush3.bf16.msra.mxu0 %v1784_v22  ;;  %v1814_v22 = vld [vmem:[#allocation5 + $0x188] sm:$0xff]  }
  0x68   :  { %1583 = vmatprep.subr.bf16.mxu0 %v1970_v0 }
  0x6b   :  { %1584 = vmatpush3.bf16.msra.mxu0 %v1785_v31 }
  0x6c   :  { %1585 = vmatprep.subr.bf16.mxu0 %v1970_v0 }
  0x6f   :  { %1586 = vmatpush3.bf16.msra.mxu0 %v1786_v32 }
  0x70   :  { %1587 = vmatprep.subr.bf16.mxu0 %v1970_v0 }
  0x73   :  { %1588 = vmatpush3.bf16.msra.mxu0 %v1787_v33  ;;  %v1817_v33 = vld [vmem:[#allocation5 + $0x1a0] sm:$0xff]  }
  0x74   :  { %1589 = vmatprep.subr.bf16.mxu0 %v1970_v0 }
  0x77   :  { %1590 = vmatpush3.bf16.msra.mxu0 %v1788_v34  ;;  %v1818_v34 = vld [vmem:[#allocation5 + $0x1a8] sm:$0xff]  }
  0x78   :  { %1615 = vmatprep.subr.bf16.mxu0 %v1970_v0 }
 0x12d   :  { %v162_v24 = vpop.f32.mrb[0].mxu0 }
 0x12e   :  { %v163_v25 = vadd.f32 %v1337_v23, %v162_v24  ;;  %v1553_v26 = vpop.f32.mrb[1].mxu0  ;;  %v1815_v23 = vld [vmem:[#allocation5 + $0x190] sm:$0xff]   ;;  %v1816_v24 = vld [vmem:[#allocation5 + $0x198] sm:$0xff]  }
 0x12f   :  { %v165_v27 = vpop.f32.mrb[2].mxu0 }
 0x130   :  { %1853 = vtanh.f32 %v163_v25  ;;  %v1554_v28 = vpop.f32.mrb[3].mxu0  ;;  %v1373_v25 = vld [vmem:[#allocation7 + $0x4] ss:$0 sm:$0xff] }
 0x13a   :  { %v1854_v29 = vpop.eup %1853 }
 0x13b   :  { %v169_v30 = vpack.c.bf16 %v1854_v29, %v1854_v29 }
 0x13d   :  { %1572 = vmatmul.mubr.bf16.vlgmr.msra.gmra.mrb[0].mxu1 %v169_v30 }
 0x13e   :  { %1611 = vmatprep.mubr.msk.bf16.mxu1 %vm1971_vm0, %v1970_v0  ;;  %1596 = vmatpush3.bf16.msra.mxu1 %v1789_v35  ;;  %v1819_v35 = vld [vmem:[#allocation5 + $0x1b0] sm:$0xff]  }
 0x13f   :  { %1597 = vmatprep.subr.bf16.mxu1 %v1970_v0 }
 0x142   :  { %1598 = vmatpush3.bf16.msra.mxu1 %v1790_v36  ;;  %v1820_v36 = vld [vmem:[#allocation5 + $0x1b8] sm:$0xff]  }
 0x143   :  { %1599 = vmatprep.subr.bf16.mxu1 %v1970_v0 }
 0x146   :  { %1600 = vmatpush3.bf16.msra.mxu1 %v1791_v37  ;;  %v1821_v37 = vld [vmem:[#allocation5 + $0x1c0] sm:$0xff]  }
 0x147   :  { %1601 = vmatprep.subr.bf16.mxu1 %v1970_v0 }
 0x14a   :  { %1602 = vmatpush3.bf16.msra.mxu1 %v1792_v38  ;;  %v1822_v38 = vld [vmem:[#allocation5 + $0x1c8] sm:$0xff]  }
 0x14b   :  { %1603 = vmatprep.subr.bf16.mxu1 %v1970_v0 }
 0x14e   :  { %1604 = vmatpush3.bf16.msra.mxu1 %v1793_v39  ;;  %v1823_v39 = vld [vmem:[#allocation5 + $0x1d0] sm:$0xff]  }
 0x14f   :  { %1605 = vmatprep.subr.bf16.mxu1 %v1970_v0 }
 0x152   :  { %1606 = vmatpush3.bf16.msra.mxu1 %v1794_v40  ;;  %v1824_v40 = vld [vmem:[#allocation5 + $0x1d8] sm:$0xff]  }
 0x153   :  { %1607 = vmatprep.subr.bf16.mxu1 %v1970_v0 }
 0x156   :  { %1608 = vmatpush3.bf16.msra.mxu1 %v1795_v49  ;;  %v1825_v49 = vld [vmem:[#allocation5 + $0x1e0] sm:$0xff]  }
 0x157   :  { %1609 = vmatprep.subr.bf16.mxu1 %v1970_v0 }
 0x15a   :  { %1610 = vmatpush3.bf16.msra.mxu1 %v1796_v50  ;;  %v1826_v50 = vld [vmem:[#allocation5 + $0x1e8] sm:$0xff]  }
 0x15b   :  { %1635 = vmatprep.subr.bf16.mxu1 %v1970_v0 }
 0x210   :  { %v277_v42 = vpop.f32.mrb[0].mxu1 }
 0x211   :  { %v278_v43 = vadd.f32 %v1346_v41, %v277_v42  ;;  %v1573_v44 = vpop.f32.mrb[1].mxu1  ;;  %v1382_v41 = vld [vmem:[#allocation7 + $0x5] ss:$0 sm:$0xff] }
 0x212   :  { %v280_v45 = vpop.f32.mrb[2].mxu1 }
 0x213   :  { %1855 = vtanh.f32 %v278_v43  ;;  %v1574_v46 = vpop.f32.mrb[3].mxu1 }
 0x21d   :  { %v1856_v47 = vpop.eup %1855 }
 0x21e   :  { %v284_v48 = vpack.c.bf16 %v1856_v47, %v1856_v47 }
 0x220   :  { %1592 = vmatmul.mubr.bf16.vlgmr.msra.gmra.mrb[4].mxu0 %v284_v48 }
 0x221   :  { %1631 = vmatprep.mubr.msk.bf16.mxu0 %vm1971_vm0, %v1970_v0  ;;  %1616 = vmatpush3.bf16.msra.mxu0 %v1797_v51  ;;  %v1827_v51 = vld [vmem:[#allocation5 + $0x1f0] sm:$0xff]  }
 0x222   :  { %1617 = vmatprep.subr.bf16.mxu0 %v1970_v0 }
 0x225   :  { %1618 = vmatpush3.bf16.msra.mxu0 %v1798_v52  ;;  %v1828_v52 = vld [vmem:[#allocation5 + $0x1f8] sm:$0xff]  }
 0x226   :  { %1619 = vmatprep.subr.bf16.mxu0 %v1970_v0 }
 0x229   :  { %1620 = vmatpush3.bf16.msra.mxu0 %v1799_v53  ;;  %v1829_v53 = vld [vmem:[#allocation5 + $0x200] sm:$0xff]  }
 0x22a   :  { %1621 = vmatprep.subr.bf16.mxu0 %v1970_v0 }
 0x22d   :  { %1622 = vmatpush3.bf16.msra.mxu0 %v1800_v54  ;;  %v1830_v54 = vld [vmem:[#allocation5 + $0x208] sm:$0xff]  }
 0x22e   :  { %1623 = vmatprep.subr.bf16.mxu0 %v1970_v0 }
 0x231   :  { %1624 = vmatpush3.bf16.msra.mxu0 %v1801_v1 }
 0x232   :  { %1625 = vmatprep.subr.bf16.mxu0 %v1970_v0 }
 0x235   :  { %1626 = vmatpush3.bf16.msra.mxu0 %v1802_v2  ;;  %v1833_v2 = vld [vmem:[#allocation5 + $0x220] sm:$0xff]  }
 0x236   :  { %1627 = vmatprep.subr.bf16.mxu0 %v1970_v0 }
 0x239   :  { %1628 = vmatpush3.bf16.msra.mxu0 %v1803_v3  ;;  %v1834_v3 = vld [vmem:[#allocation5 + $0x228] sm:$0xff]  }
 0x23a   :  { %1629 = vmatprep.subr.bf16.mxu0 %v1970_v0 }
 0x23d   :  { %1630 = vmatpush3.bf16.msra.mxu0 %v1804_v4  ;;  %v1835_v4 = vld [vmem:[#allocation5 + $0x230] sm:$0xff]  }
 0x23e   :  { %1655 = vmatprep.subr.bf16.mxu0 %v1970_v0 }
 0x2f3   :  { %v392_v56 = vpop.f32.mrb[4].mxu0 }
 0x2f4   :  { %v393_v57 = vadd.f32 %v1355_v55, %v392_v56  ;;  %v1593_v58 = vpop.f32.mrb[5].mxu0  ;;  %v1831_v55 = vld [vmem:[#allocation5 + $0x210] sm:$0xff]   ;;  %v1832_v56 = vld [vmem:[#allocation5 + $0x218] sm:$0xff]  }
 0x2f5   :  { %v395_v59 = vpop.f32.mrb[6].mxu0 }
 0x2f6   :  { %vm398_vm1 = vcmp.ge.f32.partialorder %v393_v57, 0.0  ;;  %v399_v60 = vmul.f32 0.01, %v393_v57  ;;  %v1594_v61 = vpop.f32.mrb[7].mxu0 }
 0x2f8   :  { %v400_v62 = vsel %vm398_vm1, %v393_v57, %v399_v60  ;;  %v1391_v57 = vld [vmem:[#allocation7 + $0x6] ss:$0 sm:$0xff] }
 0x2f9   :  { %v401_v63 = vpack.c.bf16 %v400_v62, %v400_v62 }
 0x2fb   :  { %1612 = vmatmul.mubr.bf16.vlgmr.msra.gmra.mrb[4].mxu1 %v401_v63 }
 0x2fc   :  { %1651 = vmatprep.mubr.msk.bf16.mxu1 %vm1971_vm0, %v1970_v0  ;;  %1636 = vmatpush3.bf16.msra.mxu1 %v1805_v5  ;;  %v1836_v5 = vld [vmem:[#allocation5 + $0x238] sm:$0xff]  }
 0x2fd   :  { %1637 = vmatprep.subr.bf16.mxu1 %v1970_v0 }
 0x300   :  { %1638 = vmatpush3.bf16.msra.mxu1 %v1806_v6  ;;  %v1837_v6 = vld [vmem:[#allocation5 + $0x240] sm:$0xff]  }
 0x301   :  { %1639 = vmatprep.subr.bf16.mxu1 %v1970_v0 }
 0x304   :  { %1640 = vmatpush3.bf16.msra.mxu1 %v1807_v7  ;;  %v1838_v7 = vld [vmem:[#allocation5 + $0x248] sm:$0xff]  }
 0x305   :  { %1641 = vmatprep.subr.bf16.mxu1 %v1970_v0 }
 0x308   :  { %1642 = vmatpush3.bf16.msra.mxu1 %v1808_v8  ;;  %v1839_v8 = vld [vmem:[#allocation5 + $0x250] sm:$0xff]  }
 0x309   :  { %1643 = vmatprep.subr.bf16.mxu1 %v1970_v0 }
 0x30c   :  { %1644 = vmatpush3.bf16.msra.mxu1 %v1809_v17 }
 0x30d   :  { %1645 = vmatprep.subr.bf16.mxu1 %v1970_v0 }
 0x310   :  { %1646 = vmatpush3.bf16.msra.mxu1 %v1810_v18  ;;  %v1841_v18 = vld [vmem:[#allocation5 + $0x260] sm:$0xff]  }
 0x311   :  { %1647 = vmatprep.subr.bf16.mxu1 %v1970_v0 }
 0x314   :  { %1648 = vmatpush3.bf16.msra.mxu1 %v1811_v19  ;;  %v1842_v19 = vld [vmem:[#allocation5 + $0x268] sm:$0xff]  }
 0x315   :  { %1649 = vmatprep.subr.bf16.mxu1 %v1970_v0 }
 0x318   :  { %1650 = vmatpush3.bf16.msra.mxu1 %v1812_v20  ;;  %v1843_v20 = vld [vmem:[#allocation5 + $0x270] sm:$0xff]  }
 0x319   :  { %1675 = vmatprep.subr.bf16.mxu1 %v1970_v0 }
 0x3ce   :  { %v509_v10 = vpop.f32.mrb[4].mxu1 }
 0x3cf   :  { %v510_v11 = vadd.f32 %v1364_v9, %v509_v10  ;;  %v1613_v12 = vpop.f32.mrb[5].mxu1  ;;  %v1840_v9 = vld [vmem:[#allocation5 + $0x258] sm:$0xff]   ;;  %v1400_v10 = vld [vmem:[#allocation7 + $0x7] ss:$0 sm:$0xff] }
 0x3d0   :  { %v512_v13 = vpop.f32.mrb[6].mxu1 }
 0x3d1   :  { %1857 = vtanh.f32 %v510_v11  ;;  %v1614_v14 = vpop.f32.mrb[7].mxu1 }
 0x3db   :  { %v1858_v15 = vpop.eup %1857 }
 0x3dc   :  { %v516_v16 = vpack.c.bf16 %v1858_v15, %v1858_v15 }
 0x3de   :  { %1632 = vmatmul.mubr.bf16.vlgmr.msra.gmra.mrb[8].mxu0 %v516_v16 }
 0x3df   :  { %1671 = vmatprep.mubr.msk.bf16.mxu0 %vm1971_vm0, %v1970_v0  ;;  %1656 = vmatpush3.bf16.msra.mxu0 %v1813_v21  ;;  %v1844_v21 = vld [vmem:[#allocation5 + $0x278] sm:$0xff]  }
 0x3e0   :  { %1657 = vmatprep.subr.bf16.mxu0 %v1970_v0 }
 0x3e3   :  { %1658 = vmatpush3.bf16.msra.mxu0 %v1814_v22  ;;  %v1845_v22 = vld [vmem:[#allocation5 + $0x280] sm:$0xff]  }
 0x3e4   :  { %1659 = vmatprep.subr.bf16.mxu0 %v1970_v0 }
 0x3e7   :  { %1660 = vmatpush3.bf16.msra.mxu0 %v1815_v23  ;;  %v1846_v23 = vld [vmem:[#allocation5 + $0x288] sm:$0xff]  }
 0x3e8   :  { %1661 = vmatprep.subr.bf16.mxu0 %v1970_v0 }
 0x3eb   :  { %1662 = vmatpush3.bf16.msra.mxu0 %v1816_v24  ;;  %v1847_v24 = vld [vmem:[#allocation5 + $0x290] sm:$0xff]  }
 0x3ec   :  { %1663 = vmatprep.subr.bf16.mxu0 %v1970_v0 }
 0x3ef   :  { %1664 = vmatpush3.bf16.msra.mxu0 %v1817_v33 }
 0x3f0   :  { %1665 = vmatprep.subr.bf16.mxu0 %v1970_v0 }
 0x3f3   :  { %1666 = vmatpush3.bf16.msra.mxu0 %v1818_v34 }
 0x3f4   :  { %1667 = vmatprep.subr.bf16.mxu0 %v1970_v0 }
 0x3f7   :  { %1668 = vmatpush3.bf16.msra.mxu0 %v1819_v35 }
 0x3f8   :  { %1669 = vmatprep.subr.bf16.mxu0 %v1970_v0 }
 0x3fb   :  { %1670 = vmatpush3.bf16.msra.mxu0 %v1820_v36  ;;  %v1851_v36 = vld [vmem:[#allocation5 + $0x2b0] sm:$0xff]  }
 0x3fc   :  { %1695 = vmatprep.subr.bf16.mxu0 %v1970_v0 }
 0x4b1   :  { %v624_v26 = vpop.f32.mrb[8].mxu0 }
 0x4b2   :  { %v625_v27 = vadd.f32 %v1373_v25, %v624_v26  ;;  %v1633_v28 = vpop.f32.mrb[9].mxu0  ;;  %v1848_v25 = vld [vmem:[#allocation5 + $0x298] sm:$0xff]   ;;  %v1849_v26 = vld [vmem:[#allocation5 + $0x2a0] sm:$0xff]  }
 0x4b3   :  { %v627_v29 = vpop.f32.mrb[10].mxu0  ;;  %v1409_v28 = vld [vmem:[#allocation7 + $0x8] ss:$0 sm:$0xff] }
 0x4b4   :  { %1859 = vtanh.f32 %v625_v27  ;;  %v1634_v30 = vpop.f32.mrb[11].mxu0  ;;  %v1850_v27 = vld [vmem:[#allocation5 + $0x2a8] sm:$0xff]  }
 0x4be   :  { %v1860_v31 = vpop.eup %1859 }
 0x4bf   :  { %v631_v32 = vpack.c.bf16 %v1860_v31, %v1860_v31 }
 0x4c1   :  { %1652 = vmatmul.mubr.bf16.vlgmr.msra.gmra.mrb[8].mxu1 %v631_v32 }
 0x4c2   :  { %1691 = vmatprep.mubr.msk.bf16.mxu1 %vm1971_vm0, %v1970_v0  ;;  %1676 = vmatpush3.bf16.msra.mxu1 %v1821_v37  ;;  %v1852_v37 = vld [vmem:[#allocation5 + $0x2b8] sm:$0xff]  }
 0x4c3   :  { %1677 = vmatprep.subr.bf16.mxu1 %v1970_v0 }
 0x4c6   :  { %1678 = vmatpush3.bf16.msra.mxu1 %v1822_v38  ;;  %v1418_v38 = vld [vmem:[#allocation7 + $0x9] ss:$0 sm:$0xff] }
 0x4c7   :  { %1679 = vmatprep.subr.bf16.mxu1 %v1970_v0 }
 0x4ca   :  { %1680 = vmatpush3.bf16.msra.mxu1 %v1823_v39 }
 0x4cb   :  { %1681 = vmatprep.subr.bf16.mxu1 %v1970_v0 }
 0x4ce   :  { %1682 = vmatpush3.bf16.msra.mxu1 %v1824_v40 }
 0x4cf   :  { %1683 = vmatprep.subr.bf16.mxu1 %v1970_v0 }
 0x4d2   :  { %1684 = vmatpush3.bf16.msra.mxu1 %v1825_v49 }
 0x4d3   :  { %1685 = vmatprep.subr.bf16.mxu1 %v1970_v0 }
 0x4d6   :  { %1686 = vmatpush3.bf16.msra.mxu1 %v1826_v50 }
 0x4d7   :  { %1687 = vmatprep.subr.bf16.mxu1 %v1970_v0 }
 0x4da   :  { %1688 = vmatpush3.bf16.msra.mxu1 %v1827_v51 }
 0x4db   :  { %1689 = vmatprep.subr.bf16.mxu1 %v1970_v0 }
 0x4de   :  { %1690 = vmatpush3.bf16.msra.mxu1 %v1828_v52 }
 0x4df   :  { %1715 = vmatprep.subr.bf16.mxu1 %v1970_v0 }
 0x594   :  { %v739_v42 = vpop.f32.mrb[8].mxu1 }
 0x595   :  { %v740_v43 = vadd.f32 %v1382_v41, %v739_v42  ;;  %v1653_v44 = vpop.f32.mrb[9].mxu1 }
 0x596   :  { %v742_v45 = vpop.f32.mrb[10].mxu1 }
 0x597   :  { %1861 = vtanh.f32 %v740_v43  ;;  %v1654_v46 = vpop.f32.mrb[11].mxu1 }
 0x598   :  { %v1427_v46 = vld [vmem:[#allocation7 + $0xa] ss:$0 sm:$0xff] }
 0x5a1   :  { %v1862_v47 = vpop.eup %1861 }
 0x5a2   :  { %v746_v48 = vpack.c.bf16 %v1862_v47, %v1862_v47 }
 0x5a4   :  { %1672 = vmatmul.mubr.bf16.vlgmr.msra.gmra.mrb[12].mxu0 %v746_v48 }
 0x5a5   :  { %1711 = vmatprep.mubr.msk.bf16.mxu0 %vm1971_vm0, %v1970_v0  ;;  %1696 = vmatpush3.bf16.msra.mxu0 %v1829_v53 }
 0x5a6   :  { %1697 = vmatprep.subr.bf16.mxu0 %v1970_v0 }
 0x5a9   :  { %1698 = vmatpush3.bf16.msra.mxu0 %v1830_v54 }
 0x5aa   :  { %1699 = vmatprep.subr.bf16.mxu0 %v1970_v0 }
 0x5ad   :  { %1700 = vmatpush3.bf16.msra.mxu0 %v1831_v55 }
 0x5ae   :  { %1701 = vmatprep.subr.bf16.mxu0 %v1970_v0 }
 0x5b1   :  { %1702 = vmatpush3.bf16.msra.mxu0 %v1832_v56 }
 0x5b2   :  { %1703 = vmatprep.subr.bf16.mxu0 %v1970_v0 }
 0x5b5   :  { %1704 = vmatpush3.bf16.msra.mxu0 %v1833_v2 }
 0x5b6   :  { %1705 = vmatprep.subr.bf16.mxu0 %v1970_v0 }
 0x5b9   :  { %1706 = vmatpush3.bf16.msra.mxu0 %v1834_v3 }
 0x5ba   :  { %1707 = vmatprep.subr.bf16.mxu0 %v1970_v0 }
 0x5bd   :  { %1708 = vmatpush3.bf16.msra.mxu0 %v1835_v4 }
 0x5be   :  { %1709 = vmatprep.subr.bf16.mxu0 %v1970_v0 }
 0x5c1   :  { %1710 = vmatpush3.bf16.msra.mxu0 %v1836_v5 }
 0x5c2   :  { %1735 = vmatprep.subr.bf16.mxu0 %v1970_v0 }
 0x677   :  { %v854_v58 = vpop.f32.mrb[12].mxu0 }
 0x678   :  { %v855_v59 = vadd.f32 %v1391_v57, %v854_v58  ;;  %v1673_v60 = vpop.f32.mrb[13].mxu0 }
 0x679   :  { %v857_v61 = vpop.f32.mrb[14].mxu0 }
 0x67a   :  { %1863 = vtanh.f32 %v855_v59  ;;  %v1674_v62 = vpop.f32.mrb[15].mxu0 }
 0x684   :  { %v1864_v63 = vpop.eup %1863 }
 0x685   :  { %v861_v1 = vpack.c.bf16 %v1864_v63, %v1864_v63 }
 0x687   :  { %1692 = vmatmul.mubr.bf16.vlgmr.msra.gmra.mrb[12].mxu1 %v861_v1 }
 0x688   :  { %1731 = vmatprep.mubr.msk.bf16.mxu1 %vm1971_vm0, %v1970_v0  ;;  %1716 = vmatpush3.bf16.msra.mxu1 %v1837_v6 }
 0x689   :  { %1717 = vmatprep.subr.bf16.mxu1 %v1970_v0 }
 0x68c   :  { %1718 = vmatpush3.bf16.msra.mxu1 %v1838_v7 }
 0x68d   :  { %1719 = vmatprep.subr.bf16.mxu1 %v1970_v0 }
 0x690   :  { %1720 = vmatpush3.bf16.msra.mxu1 %v1839_v8 }
 0x691   :  { %1721 = vmatprep.subr.bf16.mxu1 %v1970_v0 }
 0x694   :  { %1722 = vmatpush3.bf16.msra.mxu1 %v1840_v9 }
 0x695   :  { %1723 = vmatprep.subr.bf16.mxu1 %v1970_v0 }
 0x698   :  { %1724 = vmatpush3.bf16.msra.mxu1 %v1841_v18 }
 0x699   :  { %1725 = vmatprep.subr.bf16.mxu1 %v1970_v0 }
 0x69c   :  { %1726 = vmatpush3.bf16.msra.mxu1 %v1842_v19 }
 0x69d   :  { %1727 = vmatprep.subr.bf16.mxu1 %v1970_v0 }
 0x6a0   :  { %1728 = vmatpush3.bf16.msra.mxu1 %v1843_v20 }
 0x6a1   :  { %1729 = vmatprep.subr.bf16.mxu1 %v1970_v0 }
 0x6a4   :  { %1730 = vmatpush3.bf16.msra.mxu1 %v1844_v21 }
 0x75a   :  { %v969_v11 = vpop.f32.mrb[12].mxu1 }
 0x75b   :  { %v970_v12 = vadd.f32 %v1400_v10, %v969_v11  ;;  %v1693_v13 = vpop.f32.mrb[13].mxu1 }
 0x75c   :  { %v972_v14 = vpop.f32.mrb[14].mxu1 }
 0x75d   :  { %1865 = vtanh.f32 %v970_v12  ;;  %v1694_v15 = vpop.f32.mrb[15].mxu1 }
 0x767   :  { %v1866_v16 = vpop.eup %1865 }
 0x768   :  { %v976_v17 = vpack.c.bf16 %v1866_v16, %v1866_v16 }
 0x76a   :  { %1712 = vmatmul.mubr.bf16.vlgmr.msra.gmra.mrb[16].mxu0 %v976_v17 }
 0x76b   :  { %1751 = vmatprep.mubr.msk.bf16.mxu0 %vm1971_vm0, %v1970_v0  ;;  %1736 = vmatpush3.bf16.msra.mxu0 %v1845_v22 }
 0x76c   :  { %1737 = vmatprep.subr.bf16.mxu0 %v1970_v0 }
 0x76f   :  { %1738 = vmatpush3.bf16.msra.mxu0 %v1846_v23 }
 0x770   :  { %1739 = vmatprep.subr.bf16.mxu0 %v1970_v0 }
 0x773   :  { %1740 = vmatpush3.bf16.msra.mxu0 %v1847_v24 }
 0x774   :  { %1741 = vmatprep.subr.bf16.mxu0 %v1970_v0 }
 0x777   :  { %1742 = vmatpush3.bf16.msra.mxu0 %v1848_v25 }
 0x778   :  { %1743 = vmatprep.subr.bf16.mxu0 %v1970_v0 }
 0x77b   :  { %1744 = vmatpush3.bf16.msra.mxu0 %v1849_v26 }
 0x77c   :  { %1745 = vmatprep.subr.bf16.mxu0 %v1970_v0 }
 0x77f   :  { %1746 = vmatpush3.bf16.msra.mxu0 %v1850_v27 }
 0x780   :  { %1747 = vmatprep.subr.bf16.mxu0 %v1970_v0 }
 0x783   :  { %1748 = vmatpush3.bf16.msra.mxu0 %v1851_v36 }
 0x784   :  { %1749 = vmatprep.subr.bf16.mxu0 %v1970_v0 }
 0x787   :  { %1750 = vmatpush3.bf16.msra.mxu0 %v1852_v37 }
 0x83d   :  { %v1084_v29 = vpop.f32.mrb[16].mxu0 }
 0x83e   :  { %v1085_v30 = vadd.f32 %v1409_v28, %v1084_v29  ;;  %v1713_v31 = vpop.f32.mrb[17].mxu0 }
 0x83f   :  { %v1087_v32 = vpop.f32.mrb[18].mxu0 }
 0x840   :  { %1867 = vtanh.f32 %v1085_v30  ;;  %v1714_v33 = vpop.f32.mrb[19].mxu0 }
 0x84a   :  { %v1868_v34 = vpop.eup %1867 }
 0x84b   :  { %v1091_v35 = vpack.c.bf16 %v1868_v34, %v1868_v34 }
 0x84d   :  { %1732 = vmatmul.mubr.bf16.vlgmr.msra.gmra.mrb[16].mxu1 %v1091_v35 }
 0x920   :  { %v1199_v39 = vpop.f32.mrb[16].mxu1 }
 0x921   :  { %v1200_v40 = vadd.f32 %v1418_v38, %v1199_v39  ;;  %v1733_v41 = vpop.f32.mrb[17].mxu1 }
 0x922   :  { %v1202_v42 = vpop.f32.mrb[18].mxu1 }
 0x923   :  { %v1205_v43 = vmax.f32 %v1200_v40, 0.0  ;;  %v1734_v44 = vpop.f32.mrb[19].mxu1 }
 0x925   :  { %v1206_v45 = vpack.c.bf16 %v1205_v43, %v1205_v43 }
 0x927   :  { %1752 = vmatmul.mubr.bf16.vlgmr.msra.gmra.mrb[20].mxu0 %v1206_v45 }
 0x9fa   :  { %v1314_v47 = vpop.f32.mrb[20].mxu0 }
 0x9fb   :  { %v1315_v48 = vadd.f32 %v1427_v46, %v1314_v47  ;;  %v1753_v49 = vpop.f32.mrb[21].mxu0 }
 0x9fc   :  { %v1317_v50 = vpop.f32.mrb[22].mxu0 }
 0x9fd   :  { %1320 = vst [vmem:[#allocation8] sm:$0xff] %v1315_v48  ;;  %v1754_v0 = vpop.f32.mrb[23].mxu0 }
 0x9fe   :  { %1946 = shalt.err (!%p1943_p0)
}
 0x9ff   :  { %s1947_s28 = scalar_lea.hbm %s2154_s3, 128 }
 0xa00   :  { %p1948_p1 = scmp.ne.s32.totalorder %s2154_s3, %s1947_s28  ;;  %p1951_p2 = scmp.lt.u32.totalorder %s1947_s28, %s2154_s3 }
 0xa02   :  { %p1953_p3 = pnand %p1951_p2, %p1948_p1 }
 0xa04   :  { %1956 = shalt.err (!%p1953_p3)
}
 0xa05   :  { %1330 = dma.vmem_to_hbm [thread:$0]  %s1328_s24, 128, %s2154_s3, [#allocation4]  }
 0xa06   :  { %1961 = dma.done.wait [#allocation4], 128  }
 0xa07   :  { %1962 = vsyncadd [#allocation4], 4294967168 }
 0xa08   :  { %1334 = vsyncpa [#allocation3], 1 }
 0xa09   :  { %1335 = vsyncpa [#allocation6], 1 }
 0xa0a   :  { %1336 = vsyncpa [#allocation4], 1 }

</bundles_post_ra>
